<compile_context>
chip_gen: v5e
topology: v5e:2x2
jax: 0.10.0
libtpu: 0.0.40
codegen_flags: <defaults>
</compile_context>

<pallas_src>
import functools

import jax
import jax.numpy as jnp
from jax.experimental import pallas as pl
from jax.experimental.pallas import tpu as pltpu

_LANE = 128


def _round_up(x, m):
    return ((x + m - 1) // m) * m


def _choose_tiles(B, HWp, itemsize):
    """Pick a lane-dense (tb, thw) tile: thw multiple of 128 dividing HWp,
    tb targeting ~2 MiB per input block."""
    thw = _LANE
    for cand in (2048, 1024, 512, 256, 128):
        if HWp % cand == 0:
            thw = cand
            break
    target_bytes = 2 * 1024 * 1024          # ~2 MiB per input block (v7x-safe)
    tb = max(8, target_bytes // (thw * itemsize))
    tb = (tb // 8) * 8                      # sublane multiple
    if tb >= B:
        tb = B                              # full dim is always a legal block
    return tb, thw


def _flow_loss_kernel(f1x_ref, f1y_ref, f2x_ref, f2y_ref,
                      abs_ref, ang_ref, *, B, HW, tb, thw, needs_mask):
    i = pl.program_id(0)   # row-tile axis ("parallel")
    j = pl.program_id(1)   # lane-tile axis within a channel ("arbitrary" = reduction)

    @pl.when(j == 0)
    def _():
        abs_ref[...] = jnp.zeros((1, 1, thw), jnp.float32)
        ang_ref[...] = jnp.zeros((1, 1, thw), jnp.float32)

    # Cast to f32 inside the kernel (keeps HBM traffic at the input dtype width).
    a = f1x_ref[...].astype(jnp.float32)
    b = f1y_ref[...].astype(jnp.float32)
    c = f2x_ref[...].astype(jnp.float32)
    d = f2y_ref[...].astype(jnp.float32)

    len1 = jnp.sqrt(a * a + b * b)
    len2 = jnp.sqrt(c * c + d * d)

    abs_term = jnp.abs(len1 - len2)
    # Matches PyTorch precedence exactly: (dot / len1) * len2
    ang_term = (a * c + b * d) / len1 * len2

    if needs_mask:
        rows = jax.lax.broadcasted_iota(jnp.int32, (tb, thw), 0) + i * tb
        cols = jax.lax.broadcasted_iota(jnp.int32, (tb, thw), 1) + j * thw
        mask = (rows < B) & (cols < HW)
        zero = jnp.zeros_like(abs_term)
        abs_term = jnp.where(mask, abs_term, zero)
        ang_term = jnp.where(mask, ang_term, zero)

    # Cross-sublane reduce (XLU slot, hidden under the HBM DMA); accumulate into
    # the small lane-dense output blocks that stay resident across the j axis.
    abs_ref[...] += jnp.sum(abs_term, axis=0, keepdims=True).reshape(1, 1, thw)
    ang_ref[...] += jnp.sum(ang_term, axis=0, keepdims=True).reshape(1, 1, thw)


def flow_loss(flow1, flow2):
    assert flow1.shape == flow2.shape
    n, t, c, h, w = flow1.shape
    assert c >= 2, "FlowLoss uses flow channels 0 (x) and 1 (y)"

    B = n * t
    HW = h * w
    HWp = _round_up(HW, _LANE)

    def prep(flow):
        x = flow.reshape(B, c, HW)          # free reshape (contiguous)
        if HWp != HW:
            # Rare fallback (h*w not a multiple of 128): one pad copy; padded
            # columns are masked out in-kernel so the means stay unbiased.
            x = jnp.pad(x, ((0, 0), (0, 0), (0, HWp - HW)))
        return x.reshape(B, c * HWp)        # free reshape; no per-channel copies

    f1 = prep(flow1)
    f2 = prep(flow2)

    itemsize = jnp.dtype(flow1.dtype).itemsize
    tb, thw = _choose_tiles(B, HWp, itemsize)
    nI = (B + tb - 1) // tb                 # row tiles
    nJ = HWp // thw                         # lane tiles per channel
    needs_mask = (B % tb != 0) or (HWp != HW)

    # Channel selection happens purely in the index_map (column-block shift of nJ):
    x_spec = pl.BlockSpec((tb, thw), lambda i, j: (i, j))        # channel 0 (flow x)
    y_spec = pl.BlockSpec((tb, thw), lambda i, j: (i, j + nJ))   # channel 1 (flow y)
    out_spec = pl.BlockSpec((1, 1, thw), lambda i, j: (i, 0, 0))

    kernel = functools.partial(_flow_loss_kernel, B=B, HW=HW, tb=tb, thw=thw,
                               needs_mask=needs_mask)

    out_abs, out_ang = pl.pallas_call(
        kernel,
        out_shape=(jax.ShapeDtypeStruct((nI, 1, thw), jnp.float32),
                   jax.ShapeDtypeStruct((nI, 1, thw), jnp.float32)),
        grid_spec=pltpu.PrefetchScalarGridSpec(
            num_scalar_prefetch=0,
            grid=(nI, nJ),
            in_specs=[x_spec, y_spec, x_spec, y_spec],
            out_specs=[out_spec, out_spec],
        ),
        compiler_params=pltpu.CompilerParams(
            # Row-tile axis can be megacore-sharded on v7x; reduction axis last.
            dimension_semantics=("parallel", "arbitrary"),
            # 4 inputs x 2 buffers x ~2 MiB + small outputs  <=  ~17 MiB << 32 MiB,
            # safe on v5e/v6e (128 MiB physical) and v7x (64 MiB physical).
            vmem_limit_bytes=32 * 1024 * 1024,
        ),
    )(f1, f1, f2, f2)

    count = jnp.float32(B * HW)             # true element count (pad/tail excluded)
    lenth = jnp.sum(out_abs) / count
    angle = 1.0 - jnp.sum(out_ang) / count
    return lenth + angle


def _flow_loss_ref(flow1, flow2):
    n, t, c, h, w = flow1.shape
    f1 = flow1.reshape(-1, c, h, w).astype(jnp.float32)
    f2 = flow2.reshape(-1, c, h, w).astype(jnp.float32)
    len1 = jnp.sqrt(f1[:, 0] ** 2 + f1[:, 1] ** 2)
    len2 = jnp.sqrt(f2[:, 0] ** 2 + f2[:, 1] ** 2)
    lenth = jnp.mean(jnp.abs(len1 - len2))
    angle = 1.0 - jnp.mean(
        (f1[:, 0] * f2[:, 0] + f1[:, 1] * f2[:, 1]) / len1 * len2)
    return lenth + angle


if __name__ == "__main__":
    key = jax.random.PRNGKey(0)
    k1, k2 = jax.random.split(key)
    n, t, c, h, w = 2, 3, 2, 16, 16
    flow1 = jax.random.normal(k1, (n, t, c, h, w), dtype=jnp.float32)
    flow2 = jax.random.normal(k2, (n, t, c, h, w), dtype=jnp.float32)

    out = jax.block_until_ready(flow_loss(flow1, flow2))
    ref = jax.block_until_ready(_flow_loss_ref(flow1, flow2))
    assert jnp.allclose(out, ref, rtol=5e-4, atol=1e-4), (out, ref)

    print("KERNEL_OK")
</pallas_src>

<mosaic_0001>
module attributes {stable_mosaic.version = 11 : i64} {
  func.func @_flow_loss_kernel(%arg0: i32, %arg1: i32, %arg2: memref<6x256xf32, #tpu.memory_space<vmem>>, %arg3: memref<6x256xf32, #tpu.memory_space<vmem>>, %arg4: memref<6x256xf32, #tpu.memory_space<vmem>>, %arg5: memref<6x256xf32, #tpu.memory_space<vmem>>, %arg6: memref<1x1x256xf32, #tpu.memory_space<vmem>>, %arg7: memref<1x1x256xf32, #tpu.memory_space<vmem>>) attributes {dimension_semantics = [#tpu.dimension_semantics<parallel>, #tpu.dimension_semantics<arbitrary>], iteration_bounds = array<i64: 1, 1>, scalar_prefetch = 0 : i64, scratch_operands = 0 : i64, tpu.core_type = #tpu.core_type<tc>, window_params = [{transform_indices = @transform_0, window_bounds = array<i64: 6, 256>}, {transform_indices = @transform_1, window_bounds = array<i64: 6, 256>}, {transform_indices = @transform_2, window_bounds = array<i64: 6, 256>}, {transform_indices = @transform_3, window_bounds = array<i64: 6, 256>}, {transform_indices = @transform_4, window_bounds = array<i64: 1, 1, 256>}, {transform_indices = @transform_5, window_bounds = array<i64: 1, 1, 256>}]} {
    %c0_i32 = arith.constant 0 : i32
    %0 = arith.cmpi eq, %arg1, %c0_i32 : i32
    %1 = arith.extui %0 : i1 to i32
    %c0_i32_0 = arith.constant 0 : i32
    %2 = arith.cmpi ne, %1, %c0_i32_0 : i32
    scf.if %2 {
      %cst_21 = arith.constant 0.000000e+00 : f32
      %34 = vector.broadcast %cst_21 : f32 to vector<1x1x256xf32>
      %c0_22 = arith.constant 0 : index
      %c0_23 = arith.constant 0 : index
      %c0_24 = arith.constant 0 : index
      %35 = vector.load %arg6[%c0_22, %c0_23, %c0_24] : memref<1x1x256xf32, #tpu.memory_space<vmem>>, vector<1x1x256xf32>
      tpu.vector_store %arg6[%c0_22, %c0_23, %c0_24], %34 {strides = array<i32>} : memref<1x1x256xf32, #tpu.memory_space<vmem>>, vector<1x1x256xf32>,
      %cst_25 = arith.constant 0.000000e+00 : f32
      %36 = vector.broadcast %cst_25 : f32 to vector<1x1x256xf32>
      %c0_26 = arith.constant 0 : index
      %c0_27 = arith.constant 0 : index
      %c0_28 = arith.constant 0 : index
      %37 = vector.load %arg7[%c0_26, %c0_27, %c0_28] : memref<1x1x256xf32, #tpu.memory_space<vmem>>, vector<1x1x256xf32>
      tpu.vector_store %arg7[%c0_26, %c0_27, %c0_28], %36 {strides = array<i32>} : memref<1x1x256xf32, #tpu.memory_space<vmem>>, vector<1x1x256xf32>,
    } else {
    }
    %c0 = arith.constant 0 : index
    %c0_1 = arith.constant 0 : index
    %3 = vector.load %arg2[%c0, %c0_1] : memref<6x256xf32, #tpu.memory_space<vmem>>, vector<6x256xf32>
    %c0_2 = arith.constant 0 : index
    %c0_3 = arith.constant 0 : index
    %4 = vector.load %arg3[%c0_2, %c0_3] : memref<6x256xf32, #tpu.memory_space<vmem>>, vector<6x256xf32>
    %c0_4 = arith.constant 0 : index
    %c0_5 = arith.constant 0 : index
    %5 = vector.load %arg4[%c0_4, %c0_5] : memref<6x256xf32, #tpu.memory_space<vmem>>, vector<6x256xf32>
    %c0_6 = arith.constant 0 : index
    %c0_7 = arith.constant 0 : index
    %6 = vector.load %arg5[%c0_6, %c0_7] : memref<6x256xf32, #tpu.memory_space<vmem>>, vector<6x256xf32>
    %7 = arith.mulf %3, %3 : vector<6x256xf32>
    %8 = arith.mulf %4, %4 : vector<6x256xf32>
    %9 = arith.addf %7, %8 : vector<6x256xf32>
    %10 = math.sqrt %9 : vector<6x256xf32>
    %11 = arith.mulf %5, %5 : vector<6x256xf32>
    %12 = arith.mulf %6, %6 : vector<6x256xf32>
    %13 = arith.addf %11, %12 : vector<6x256xf32>
    %14 = math.sqrt %13 : vector<6x256xf32>
    %15 = arith.subf %10, %14 : vector<6x256xf32>
    %16 = math.absf %15 : vector<6x256xf32>
    %17 = arith.mulf %3, %5 : vector<6x256xf32>
    %18 = arith.mulf %4, %6 : vector<6x256xf32>
    %19 = arith.addf %17, %18 : vector<6x256xf32>
    %20 = arith.divf %19, %10 : vector<6x256xf32>
    %21 = arith.mulf %20, %14 : vector<6x256xf32>
    %c0_8 = arith.constant 0 : index
    %c0_9 = arith.constant 0 : index
    %c0_10 = arith.constant 0 : index
    %22 = vector.load %arg6[%c0_8, %c0_9, %c0_10] : memref<1x1x256xf32, #tpu.memory_space<vmem>>, vector<1x1x256xf32>
    %cst = arith.constant dense<0.000000e+00> : vector<256xf32>
    %23 = vector.multi_reduction <add>, %16, %cst [0] : vector<6x256xf32> to vector<256xf32>
    %24 = vector.shape_cast %23 : vector<256xf32> to vector<1x256xf32>
    %25 = vector.shape_cast %24 : vector<1x256xf32> to vector<1x1x256xf32>
    %26 = arith.addf %22, %25 : vector<1x1x256xf32>
    %c0_11 = arith.constant 0 : index
    %c0_12 = arith.constant 0 : index
    %c0_13 = arith.constant 0 : index
    %27 = vector.load %arg6[%c0_11, %c0_12, %c0_13] : memref<1x1x256xf32, #tpu.memory_space<vmem>>, vector<1x1x256xf32>
    tpu.vector_store %arg6[%c0_11, %c0_12, %c0_13], %26 {strides = array<i32>} : memref<1x1x256xf32, #tpu.memory_space<vmem>>, vector<1x1x256xf32>,
    %c0_14 = arith.constant 0 : index
    %c0_15 = arith.constant 0 : index
    %c0_16 = arith.constant 0 : index
    %28 = vector.load %arg7[%c0_14, %c0_15, %c0_16] : memref<1x1x256xf32, #tpu.memory_space<vmem>>, vector<1x1x256xf32>
    %cst_17 = arith.constant dense<0.000000e+00> : vector<256xf32>
    %29 = vector.multi_reduction <add>, %21, %cst_17 [0] : vector<6x256xf32> to vector<256xf32>
    %30 = vector.shape_cast %29 : vector<256xf32> to vector<1x256xf32>
    %31 = vector.shape_cast %30 : vector<1x256xf32> to vector<1x1x256xf32>
    %32 = arith.addf %28, %31 : vector<1x1x256xf32>
    %c0_18 = arith.constant 0 : index
    %c0_19 = arith.constant 0 : index
    %c0_20 = arith.constant 0 : index
    %33 = vector.load %arg7[%c0_18, %c0_19, %c0_20] : memref<1x1x256xf32, #tpu.memory_space<vmem>>, vector<1x1x256xf32>
    tpu.vector_store %arg7[%c0_18, %c0_19, %c0_20], %32 {strides = array<i32>} : memref<1x1x256xf32, #tpu.memory_space<vmem>>, vector<1x1x256xf32>,
    return
  }
  func.func @transform_0(%arg0: i32, %arg1: i32) -> (i32, i32) {
    %c0_i32 = arith.constant 0 : i32
    return %arg0, %arg1 : i32, i32
  }
  func.func @transform_1(%arg0: i32, %arg1: i32) -> (i32, i32) {
    %c1_i32 = arith.constant 1 : i32
    %0 = arith.addi %arg1, %c1_i32 : i32
    %c0_i32 = arith.constant 0 : i32
    return %arg0, %0 : i32, i32
  }
  func.func @transform_2(%arg0: i32, %arg1: i32) -> (i32, i32) {
    %c0_i32 = arith.constant 0 : i32
    return %arg0, %arg1 : i32, i32
  }
  func.func @transform_3(%arg0: i32, %arg1: i32) -> (i32, i32) {
    %c1_i32 = arith.constant 1 : i32
    %0 = arith.addi %arg1, %c1_i32 : i32
    %c0_i32 = arith.constant 0 : i32
    return %arg0, %0 : i32, i32
  }
  func.func @transform_4(%arg0: i32, %arg1: i32) -> (i32, i32, i32) {
    %c0_i32 = arith.constant 0 : i32
    %c0_i32_0 = arith.constant 0 : i32
    %c0_i32_1 = arith.constant 0 : i32
    return %arg0, %c0_i32, %c0_i32_0 : i32, i32, i32
  }
  func.func @transform_5(%arg0: i32, %arg1: i32) -> (i32, i32, i32) {
    %c0_i32 = arith.constant 0 : i32
    %c0_i32_0 = arith.constant 0 : i32
    %c0_i32_1 = arith.constant 0 : i32
    return %arg0, %c0_i32, %c0_i32_0 : i32, i32, i32
  }
}

</mosaic_0001>

<bundles_post_ra>
// kernel: tpu_custom_call.1
= control target key start
LH: loop header
LB: loop body
LE: loop exit
PB: predicated region body
PF: predicated region fallthrough
CT: control target
= control target key end

     0   :  { %11 = vsyncpa [#allocation3], 0  ;;  %s591_s0 = inlined_call_operand.hbm [shape: f32[6,512], index: 0, kind: input, shape index: {}]   ;;  %s592_s1 = inlined_call_operand.hbm [shape: f32[6,512], index: 1, kind: input, shape index: {}]   ;;  %s593_s2 = inlined_call_operand.hbm [shape: f32[6,512], index: 2, kind: input, shape index: {}]   ;;  %s594_s3 = inlined_call_operand.hbm [shape: f32[6,512], index: 3, kind: input, shape index: {}]   ;;  %s595_s4 = inlined_call_operand.hbm [shape: f32[1,1,256], index: 4, kind: output, shape index: {0}]   ;;  %s596_s5 = inlined_call_operand.hbm [shape: f32[1,1,256], index: 5, kind: output, shape index: {1}]  }
   0x1   :  { %12 = vsyncpa [#allocation6], 0 }
   0x2   :  { %13 = vsyncpa [#allocation9], 0 }
   0x3   :  { %14 = vsyncpa [#allocation4], 0  ;;  %s293_s20 = scalar_lea.hbm %s592_s1, 16 }
   0x4   :  { %15 = vsyncpa [#allocation12], 0  ;;  %s36_s21 = sshll.u32 %s293_s20, 4  ;;  %s468_s22 = smov [#allocation5]   ;;  %s37_s21 = int_to_ptr.hbm [resolvable:$true] %s36_s21 }
   0x5   :  { %s38_s23 = sshll.u32 %s468_s22, 4  ;;  %s21_s26 = sshll.u32 %s591_s0, 4  ;;  %s39_s23 = int_to_ptr.vmem [resolvable:$true] %s38_s23  ;;  %s22_s26 = int_to_ptr.hbm [resolvable:$true] %s21_s26 }
   0x6   :  { %41 = dma.hbm_to_vmem [thread:$0]  %s37_s21, 256, %s39_s23, [#allocation6]  }
   0x7   :  { %s469_s27 = smov [#allocation2]   ;;  %s47_s6 = sshll.u32 %s593_s2, 4  ;;  %s48_s6 = int_to_ptr.hbm [resolvable:$true] %s47_s6 }
   0x8   :  { %s23_s28 = sshll.u32 %s469_s27, 4  ;;  %s470_s1 = smov [#allocation7]   ;;  %s24_s28 = int_to_ptr.vmem [resolvable:$true] %s23_s28 }
   0x9   :  { %26 = dma.hbm_to_vmem [thread:$0]  %s22_s26, 256, %s24_s28, [#allocation3]  }
   0xa   :  { %s49_s7 = sshll.u32 %s470_s1, 4  ;;  %s294_s10 = scalar_lea.hbm %s594_s3, 16  ;;  %s50_s7 = int_to_ptr.vmem [resolvable:$true] %s49_s7 }
   0xb   :  { %s62_s11 = sshll.u32 %s294_s10, 4  ;;  %s471_s0 = smov [#allocation8]   ;;  %s63_s11 = int_to_ptr.hbm [resolvable:$true] %s62_s11 }
   0xc   :  { %52 = dma.hbm_to_vmem [thread:$0]  %s48_s6, 256, %s50_s7, [#allocation6]  }
   0xd   :  { %s64_s12 = sshll.u32 %s471_s0, 4  ;;  %s65_s12 = int_to_ptr.vmem [resolvable:$true] %s64_s12 }
   0xe   :  { %67 = dma.hbm_to_vmem [thread:$0]  %s63_s11, 256, %s65_s12, [#allocation9]  }
   0xf   :  { %458 = dma.done.wait [#allocation3], 256  }
  0x10   :  { %459 = vsyncadd [#allocation3], 4294967040 }
  0x11   :  { %460 = dma.done.wait [#allocation6], 512  }
  0x12   :  { %461 = vsyncadd [#allocation6], 4294966784 }
  0x13   :  { %462 = dma.done.wait [#allocation9], 256  }
  0x14   :  { %463 = vsyncadd [#allocation9], 4294967040  ;;  %v92_v0 = vlaneseq  ;;  %v472_v2 = vmov 0.0   ;;  %v525_v3 = vld [vmem:[#allocation2] sm:$0x3f]  ;;  %vm209_vm9 = vcmask 1045504  }
  0x15   :  { %v527_v4 = vld [vmem:[#allocation2 + $0x8] sm:$0x3f]  ;;  %v529_v5 = vld [vmem:[#allocation5] sm:$0x3f]  ;;  %v531_v6 = vld [vmem:[#allocation5 + $0x8] sm:$0x3f]  ;;  %v106_v9 = vmul.f32 %v525_v3, %v525_v3 }
  0x16   :  { %vm517_vm0 = vcmp.lt.s32.totalorder %v92_v0, 256  ;;  %v533_v7 = vld [vmem:[#allocation7] sm:$0x3f]  ;;  %v535_v8 = vld [vmem:[#allocation7 + $0x8] sm:$0x3f]  ;;  %v107_v10 = vmul.f32 %v527_v4, %v527_v4  ;;  %v108_v11 = vmul.f32 %v529_v5, %v529_v5  ;;  %v109_v14 = vmul.f32 %v531_v6, %v531_v6  ;;  %s265_s13 = sshll.u32 %s595_s4, 4  ;;  %s266_s13 = int_to_ptr.hbm [resolvable:$true] %s265_s13 }
  0x17   :  { %96 = vst.msk [vmem:[#allocation10] sm:$0x3] %vm517_vm0, %v472_v2  ;;  %v543_v12 = vld [vmem:[#allocation8] sm:$0x3f]  ;;  %v545_v13 = vld [vmem:[#allocation8 + $0x8] sm:$0x3f]  ;;  %v136_v15 = vmul.f32 %v533_v7, %v533_v7  ;;  %v137_v17 = vmul.f32 %v535_v8, %v535_v8 }
  0x18   :  { %97 = vst.msk [vmem:[#allocation11] sm:$0x3] %vm517_vm0, %v472_v2  ;;  %v110_v16 = vadd.f32 %v108_v11, %v106_v9  ;;  %v138_v18 = vmul.f32 %v543_v12, %v543_v12  ;;  %v139_v19 = vmul.f32 %v545_v13, %v545_v13  ;;  %v111_v20 = vadd.f32 %v109_v14, %v107_v10  ;;  %s473_s14 = smov [#allocation10]   ;;  %s474_s4 = smov [#allocation11]  }
  0x19   :  { %v171_v2 = vmul.f32 %v535_v8, %v527_v4  ;;  %v173_v9 = vmul.f32 %v545_v13, %v531_v6  ;;  %v170_v14 = vmul.f32 %v533_v7, %v525_v3  ;;  %s263_s15 = sshll.u32 %s473_s14, 4  ;;  %s274_s16 = sshll.u32 %s474_s4, 4  ;;  %s264_s15 = int_to_ptr.vmem [resolvable:$true] %s263_s15  ;;  %s275_s16 = int_to_ptr.vmem [resolvable:$true] %s274_s16 }
  0x1a   :  { %302 = vrsqrt.f32 %v110_v16  ;;  %v140_v21 = vadd.f32 %v138_v18, %v136_v15  ;;  %v141_v22 = vadd.f32 %v139_v19, %v137_v17  ;;  %vm119_vm1 = vcmp.eq.f32.partialorder %v110_v16, inf  ;;  %s276_s19 = sshll.u32 %s596_s5, 4  ;;  %s277_s19 = int_to_ptr.hbm [resolvable:$true] %s276_s19 }
  0x1b   :  { %304 = vrsqrt.f32 %v111_v20  ;;  %vm121_vm2 = vcmp.eq.f32.partialorder %v110_v16, 0.0  ;;  %v122_v41 = vand.u32 2147483648, %v110_v16  ;;  %vm131_vm3 = vcmp.eq.f32.partialorder %v111_v20, inf }
  0x1c   :  { %306 = vrsqrt.f32 %v140_v21  ;;  %v134_v45 = vand.u32 2147483648, %v111_v20  ;;  %vm133_vm4 = vcmp.eq.f32.partialorder %v111_v20, 0.0  ;;  %vm149_vm5 = vcmp.eq.f32.partialorder %v140_v21, inf }
  0x1d   :  { %308 = vrsqrt.f32 %v141_v22  ;;  %vm151_vm6 = vcmp.eq.f32.partialorder %v140_v21, 0.0  ;;  %v152_v51 = vand.u32 2147483648, %v140_v21  ;;  %vm161_vm7 = vcmp.eq.f32.partialorder %v141_v22, inf }
  0x1e   :  { %v164_v57 = vand.u32 2147483648, %v141_v22  ;;  %vm163_vm8 = vcmp.eq.f32.partialorder %v141_v22, 0.0  ;;  %v172_v15 = vmul.f32 %v543_v12, %v529_v5 }
  0x20   :  { %v303_v23 = vpop.eup %302 }
  0x21   :  { %v305_v24 = vpop.eup %304  ;;  %v113_v25 = vmul.f32 %v303_v23, %v110_v16 }
  0x22   :  { %v125_v26 = vmul.f32 %v305_v24, %v111_v20  ;;  %v307_v28 = vpop.eup %306 }
  0x23   :  { %v114_v27 = vmul.f32 %v303_v23, %v113_v25  ;;  %v309_v30 = vpop.eup %308  ;;  %v143_v32 = vmul.f32 %v307_v28, %v140_v21  ;;  %v174_v25 = vadd.f32 %v172_v15, %v170_v14 }
  0x24   :  { %v126_v29 = vmul.f32 %v305_v24, %v125_v26  ;;  %v155_v34 = vmul.f32 %v309_v30, %v141_v22 }
  0x25   :  { %v115_v31 = vmul.f32 0.5, %v114_v27  ;;  %v144_v36 = vmul.f32 %v307_v28, %v143_v32 }
  0x26   :  { %v127_v33 = vmul.f32 0.5, %v126_v29  ;;  %v156_v38 = vmul.f32 %v309_v30, %v155_v34 }
  0x27   :  { %v116_v35 = vsub.f32 1.5, %v115_v31  ;;  %v145_v40 = vmul.f32 0.5, %v144_v36 }
  0x28   :  { %v128_v37 = vsub.f32 1.5, %v127_v33  ;;  %v157_v43 = vmul.f32 0.5, %v156_v38  ;;  %v175_v33 = vadd.f32 %v173_v9, %v171_v2 }
  0x29   :  { %v117_v39 = vmul.f32 %v303_v23, %v116_v35  ;;  %v146_v46 = vsub.f32 1.5, %v145_v40 }
  0x2a   :  { %v129_v42 = vmul.f32 %v305_v24, %v128_v37  ;;  %v158_v48 = vsub.f32 1.5, %v157_v43 }
  0x2b   :  { %v118_v44 = vmul.f32 %v117_v39, %v110_v16  ;;  %v147_v50 = vmul.f32 %v307_v28, %v146_v46 }
  0x2c   :  { %v130_v47 = vmul.f32 %v129_v42, %v111_v20  ;;  %v159_v54 = vmul.f32 %v309_v30, %v158_v48 }
  0x2d   :  { %v120_v49 = vsel %vm119_vm1, %v110_v16, %v118_v44  ;;  %v148_v56 = vmul.f32 %v147_v50, %v140_v21  ;;  %v208_v50 = vld [vmem:[#allocation10] sm:$0x3] }
  0x2e   :  { %v123_v52 = vsel %vm121_vm2, %v122_v41, %v120_v49  ;;  %v132_v53 = vsel %vm131_vm3, %v111_v20, %v130_v47  ;;  %v160_v58 = vmul.f32 %v159_v54, %v141_v22  ;;  %vm227_vm3 = vcmask 1040384  }
  0x2f   :  { %v135_v55 = vsel %vm133_vm4, %v134_v45, %v132_v53  ;;  %310 = vrcp.f32 %v123_v52  ;;  %v150_v59 = vsel %vm149_vm5, %v140_v21, %v148_v56  ;;  %vm181_vm10 = vweird.f32 %v123_v52 }
  0x30   :  { %312 = vrcp.f32 %v135_v55  ;;  %v153_v60 = vsel %vm151_vm6, %v152_v51, %v150_v59  ;;  %v162_v61 = vsel %vm161_vm7, %v141_v22, %v160_v58  ;;  %v185_v19 = vand.u32 2147483647, %v123_v52 }
  0x31   :  { %v165_v62 = vsel %vm163_vm8, %v164_v57, %v162_v61  ;;  %v166_v63 = vsub.f32 %v123_v52, %v153_v60  ;;  %v187_v20 = vand.u32 2147483648, %v123_v52  ;;  %vm196_vm11 = vweird.f32 %v135_v55 }
  0x32   :  { %v167_v0 = vsub.f32 %v135_v55, %v165_v62  ;;  %v202_v8 = vand.u32 2147483648, %v135_v55  ;;  %v200_v5 = vand.u32 2147483647, %v135_v55  ;;  %vm186_vm15 = vcmp.eq.f32.partialorder %v185_v19, 8.507059e+37 }
  0x33   :  { %v168_v11 = vand.u32 2147483647, %v166_v63  ;;  %v188_v27 = vor.u32 1.1754944e-38, %v187_v20 }
  0x34   :  { %v169_v17 = vand.u32 2147483647, %v167_v0  ;;  %v203_v31 = vor.u32 1.1754944e-38, %v202_v8  ;;  %vm201_vm2 = vcmp.eq.f32.partialorder %v200_v5, 8.507059e+37 }
  0x35   :  { %v311_v10 = vpop.eup %310  ;;  %v210_v21 = vsel %vm209_vm9, %v168_v11, 0.0 }
  0x36   :  { %v313_v16 = vpop.eup %312  ;;  %v177_v18 = vmul.f32 %v311_v10, %v123_v52  ;;  %v211_v6 = vrot.slane %v210_v21, 4  ;;  %v217_v13 = vsel %vm209_vm9, %v169_v17, 0.0  ;;  %vm182_vm12 = vweird.f32 %v311_v10 }
  0x37   :  { %v192_v4 = vmul.f32 %v313_v16, %v135_v55  ;;  %v218_v3 = vrot.slane %v217_v13, 4  ;;  %vm197_vm13 = vweird.f32 %v313_v16  ;;  %vm570_vm14 = vmor %vm181_vm10, %vm182_vm12 }
  0x38   :  { %v178_v22 = vsub.f32 1.0, %v177_v18  ;;  %v212_v12 = vadd.f32 %v211_v6, %v210_v21  ;;  %vm198_vm1 = vmor %vm196_vm11, %vm197_vm13 }
  0x39   :  { %v193_v7 = vsub.f32 1.0, %v192_v4  ;;  %v219_v24 = vadd.f32 %v218_v3, %v217_v13 }
  0x3a   :  { %v179_v23 = vmul.f32 %v311_v10, %v178_v22  ;;  %v213_v29 = vrot.slane %v212_v12, 2 }
  0x3b   :  { %v194_v28 = vmul.f32 %v313_v16, %v193_v7  ;;  %v220_v32 = vrot.slane %v219_v24, 2 }
  0x3c   :  { %v180_v30 = vadd.f32 %v311_v10, %v179_v23  ;;  %v214_v35 = vadd.f32 %v213_v29, %v212_v12 }
  0x3d   :  { %v195_v34 = vadd.f32 %v313_v16, %v194_v28  ;;  %v221_v37 = vadd.f32 %v220_v32, %v219_v24 }
  0x3e   :  { %v184_v36 = vsel %vm570_vm14, %v311_v10, %v180_v30  ;;  %v215_v40 = vrot.slane %v214_v35, 1  ;;  %v236_v10 = vld [vmem:[#allocation11] sm:$0x3] }
  0x3f   :  { %v189_v38 = vsel %vm186_vm15, %v188_v27, %v184_v36  ;;  %v199_v39 = vsel %vm198_vm1, %v313_v16, %v195_v34  ;;  %v222_v43 = vrot.slane %v221_v37, 1 }
  0x40   :  { %v190_v41 = vmul.f32 %v189_v38, %v174_v25  ;;  %v204_v42 = vsel %vm201_vm2, %v203_v31, %v199_v39  ;;  %v216_v46 = vadd.f32 %v215_v40, %v214_v35 }
  0x41   :  { %v205_v44 = vmul.f32 %v204_v42, %v175_v33  ;;  %v223_v47 = vadd.f32 %v222_v43, %v221_v37 }
  0x42   :  { %v206_v45 = vmul.f32 %v190_v41, %v153_v60 }
  0x43   :  { %v207_v48 = vmul.f32 %v205_v44, %v165_v62  ;;  %v226_v51 = vrot.slane %v223_v47, 7 }
  0x44   :  { %v237_v49 = vsel %vm209_vm9, %v206_v45, 0.0 }
  0x45   :  { %v238_v52 = vrot.slane %v237_v49, 4  ;;  %v244_v53 = vsel %vm209_vm9, %v207_v48, 0.0  ;;  %v228_v55 = vsel %vm227_vm3, %v216_v46, %v226_v51 }
  0x46   :  { %v245_v54 = vrot.slane %v244_v53, 4  ;;  %v230_v57 = vadd.f32 %v228_v55, %v208_v50 }
  0x47   :  { %v239_v56 = vadd.f32 %v238_v52, %v237_v49 }
  0x48   :  { %v246_v58 = vadd.f32 %v245_v54, %v244_v53  ;;  %235 = vst.msk [vmem:[#allocation10] sm:$0x3] %vm517_vm0, %v230_v57 }
  0x49   :  { %v240_v59 = vrot.slane %v239_v56, 2  ;;  %268 = dma.vmem_to_hbm [thread:$0]  %s264_s15, 32, %s266_s13, [#allocation4]  }
  0x4a   :  { %v247_v60 = vrot.slane %v246_v58, 2 }
  0x4b   :  { %v241_v61 = vadd.f32 %v240_v59, %v239_v56 }
  0x4c   :  { %v248_v62 = vadd.f32 %v247_v60, %v246_v58 }
  0x4d   :  { %v242_v63 = vrot.slane %v241_v61, 1 }
  0x4e   :  { %v249_v0 = vrot.slane %v248_v62, 1 }
  0x4f   :  { %v243_v2 = vadd.f32 %v242_v63, %v241_v61 }
  0x50   :  { %v250_v9 = vadd.f32 %v249_v0, %v248_v62 }
  0x52   :  { %v253_v11 = vrot.slane %v250_v9, 7 }
  0x54   :  { %v254_v14 = vsel %vm227_vm3, %v243_v2, %v253_v11 }
  0x55   :  { %v256_v15 = vadd.f32 %v254_v14, %v236_v10 }
  0x57   :  { %257 = vst.msk [vmem:[#allocation11] sm:$0x3] %vm517_vm0, %v256_v15 }
  0x58   :  { %279 = dma.vmem_to_hbm [thread:$0]  %s275_s16, 32, %s277_s19, [#allocation12]  }
  0x59   :  { %464 = dma.done.wait [#allocation4], 32  }
  0x5a   :  { %465 = vsyncadd [#allocation4], 4294967264 }
  0x5b   :  { %466 = dma.done.wait [#allocation12], 32  }
  0x5c   :  { %467 = vsyncadd [#allocation12], 4294967264 }
  0x5d   :  { %288 = vsyncpa [#allocation3], 1 }
  0x5e   :  { %289 = vsyncpa [#allocation6], 1 }
  0x5f   :  { %290 = vsyncpa [#allocation9], 1 }
  0x60   :  { %291 = vsyncpa [#allocation4], 1 }
  0x61   :  { %292 = vsyncpa [#allocation12], 1 }

</bundles_post_ra>
